<compile_context>
chip_gen: v6e
topology: v6e:2x2x1
jax: 0.10.0
libtpu: 0.0.40
codegen_flags: <defaults>
</compile_context>

<pallas_src>
import functools
import math

import jax
import jax.numpy as jnp
from jax.experimental import pallas as pl
from jax.experimental.pallas import tpu as pltpu


def _margin_cosine_kernel(s, m, eps, tn, mxu_dtype,
                          x_ref, w_ref, xnorm_ref, wnorm_ref, label_ref,
                          out_ref, logits_ref):
    # Grid is (C tiles, B tiles): C is the slow axis -> the W tile index is
    # constant across the inner B loop and its HBM->VMEM DMA is issued once.
    j = pl.program_id(0)  # C-tile index

    # MXU: inner products, contracting the feature dim of BOTH operands
    # (native "RHS transposed" form; no materialized w.T).  bf16 by default,
    # f32 accumulation.
    ip = jax.lax.dot_general(
        x_ref[...].astype(mxu_dtype),
        w_ref[...].astype(mxu_dtype),
        dimension_numbers=(((1,), (1,)), ((), ())),
        preferred_element_type=jnp.float32,
    )                                                       # (tm, tn) f32

    # Norms are precomputed in f32 in the wrapper; only tiny vector math here.
    x_norm = xnorm_ref[...]                                 # (tm, 1)
    w_norm_t = wnorm_ref[...].T                             # (1, tn)
    inv_x = s / x_norm                                      # s folded into the (tm,1) vector
    inv_w = 1.0 / w_norm_t                                  # (1, tn)

    # torch: cosine = ip / clamp(||x|| outer ||w||, min=eps).
    # denom is used only as the clamp mask, never as a multiplied operand.
    denom = x_norm * w_norm_t                               # (tm, tn)
    sc = ip * jnp.where(denom >= eps, inv_x * inv_w, s / eps)   # == s * cosine

    # Margin fused as a select against a per-tile-shifted label: the shift is a
    # (tm,1) integer op, the iota needs no full-tile offset add.
    local_label = label_ref[...] - j * tn                   # (tm, 1) int32
    col = jax.lax.broadcasted_iota(jnp.int32, sc.shape, 1)
    logits_ref[...] = sc.astype(logits_ref.dtype)
    out_ref[...] = jnp.where(col == local_label, sc + s * m, sc).astype(out_ref.dtype)


def margin_cosine_product(x, weight, label, *, s=30.0, m=-0.35, eps=1e-8,
                          block_b=256, block_c=512, mxu_dtype=jnp.bfloat16):
    """x: (B, D), weight: (C, D), label: (B,) int.

    Returns (s * (cosine + one_hot(label) * m), s * cosine), both f32 (B, C).
    """
    B, D = x.shape
    C, Dw = weight.shape
    assert D == Dw, "feature dims must match"

    # Tile sizes.  A full-extent block is always layout-legal; otherwise the
    # sublane (B) tile must be a multiple of 8 and the lane (C) tile a multiple
    # of 128.  Ragged last tiles are fine (no padding of x / W / outputs).
    if B <= block_b:
        tm = B
    else:
        assert block_b % 8 == 0, "block_b must be a multiple of 8"
        tm = block_b
    if C <= block_c:
        tn = C
    else:
        assert block_c % 128 == 0, "block_c must be a multiple of 128"
        tn = block_c

    n_b = (B + tm - 1) // tm
    n_c = (C + tn - 1) // tn

    # Exact f32 norms, computed once in the wrapper (hoisted out of the grid;
    # stays f32-exact even when the MXU path runs in bf16).
    xf = x.astype(jnp.float32)
    wf = weight.astype(jnp.float32)
    x_norm = jnp.sqrt(jnp.sum(xf * xf, axis=1, keepdims=True))      # (B, 1)
    w_norm = jnp.sqrt(jnp.sum(wf * wf, axis=1, keepdims=True))      # (C, 1)
    label2d = label.reshape(B, 1).astype(jnp.int32)

    kernel = functools.partial(_margin_cosine_kernel, float(s), float(m),
                               float(eps), tn, mxu_dtype)

    # Explicit VMEM budget: double-buffered x/W tiles + double-buffered f32
    # output tiles + in-kernel f32 temporaries + headroom.
    x_bytes = jnp.dtype(x.dtype).itemsize
    w_bytes = jnp.dtype(weight.dtype).itemsize
    vmem_bytes = (2 * (tm * D * x_bytes + tn * D * w_bytes)
                  + 2 * 2 * tm * tn * 4
                  + 6 * tm * tn * 4
                  + (2 << 20))
    vmem_limit = int(min(max(vmem_bytes, 32 << 20), 100 << 20))

    out, logits = pl.pallas_call(
        kernel,
        out_shape=(
            jax.ShapeDtypeStruct((B, C), jnp.float32),
            jax.ShapeDtypeStruct((B, C), jnp.float32),
        ),
        grid=(n_c, n_b),   # C outer/slow: W read from HBM exactly once per core
        in_specs=[
            pl.BlockSpec((tm, D), lambda c, b: (b, 0)),   # x rows (small, re-streamed)
            pl.BlockSpec((tn, D), lambda c, b: (c, 0)),   # W rows (large, resident per c)
            pl.BlockSpec((tm, 1), lambda c, b: (b, 0)),   # precomputed ||x||
            pl.BlockSpec((tn, 1), lambda c, b: (c, 0)),   # precomputed ||w||
            pl.BlockSpec((tm, 1), lambda c, b: (b, 0)),   # labels
        ],
        out_specs=(
            pl.BlockSpec((tm, tn), lambda c, b: (b, c)),
            pl.BlockSpec((tm, tn), lambda c, b: (b, c)),
        ),
        compiler_params=pltpu.CompilerParams(
            dimension_semantics=("parallel", "arbitrary"),
            vmem_limit_bytes=vmem_limit,
        ),
    )(x, weight, x_norm, w_norm, label2d)

    return out, logits


def _reference(x, weight, label, s=30.0, m=-0.35, eps=1e-8):
    ip = jnp.dot(x, weight.T, precision=jax.lax.Precision.HIGHEST)
    w1 = jnp.linalg.norm(x, axis=1)
    w2 = jnp.linalg.norm(weight, axis=1)
    cosine = ip / jnp.maximum(jnp.outer(w1, w2), eps)
    one_hot = jax.nn.one_hot(label, weight.shape[0], dtype=cosine.dtype)
    return s * (cosine + one_hot * m), s * cosine


if __name__ == "__main__":
    key = jax.random.PRNGKey(0)
    s_param, m_param = 30.0, -0.35

    # --- Test 1: single-tile shapes matching the module's toy config, exact f32 MXU path. ---
    B, in_features, out_features = 8, 32, 16
    k_x, k_w, k_l = jax.random.split(key, 3)
    x = jax.random.normal(k_x, (B, in_features), dtype=jnp.float32)
    bound = math.sqrt(6.0 / (in_features + out_features))  # xavier_uniform_ bound
    weight = jax.random.uniform(k_w, (out_features, in_features),
                                dtype=jnp.float32, minval=-bound, maxval=bound)
    label = jax.random.randint(k_l, (B,), 0, out_features, dtype=jnp.int32)

    out, logits = margin_cosine_product(x, weight, label, s=s_param, m=m_param,
                                        mxu_dtype=jnp.float32)
    out = jax.block_until_ready(out)
    logits = jax.block_until_ready(logits)

    ref_out, ref_logits = _reference(x, weight, label, s=s_param, m=m_param)
    assert jnp.allclose(out, ref_out, atol=1e-4, rtol=1e-4), "output mismatch (test 1)"
    assert jnp.allclose(logits, ref_logits, atol=1e-4, rtol=1e-4), "logits mismatch (test 1)"

    # --- Test 2: multi-tile grid with ragged tails on BOTH axes, default bf16 MXU path. ---
    B2, D2, C2 = 12, 64, 300
    k_x2, k_w2, k_l2 = jax.random.split(jax.random.PRNGKey(0), 3)
    x2 = jax.random.normal(k_x2, (B2, D2), dtype=jnp.float32)
    bound2 = math.sqrt(6.0 / (D2 + C2))
    w2 = jax.random.uniform(k_w2, (C2, D2), dtype=jnp.float32, minval=-bound2, maxval=bound2)
    l2 = jax.random.randint(k_l2, (B2,), 0, C2, dtype=jnp.int32)

    out2, logits2 = margin_cosine_product(x2, w2, l2, s=s_param, m=m_param,
                                          block_b=8, block_c=128)
    out2 = jax.block_until_ready(out2)
    logits2 = jax.block_until_ready(logits2)

    # bf16-simulated reference: bf16-rounded matmul operands, exact f32 norms.
    x2b = x2.astype(jnp.bfloat16).astype(jnp.float32)
    w2b = w2.astype(jnp.bfloat16).astype(jnp.float32)
    ip2 = jnp.dot(x2b, w2b.T, precision=jax.lax.Precision.HIGHEST)
    n1 = jnp.linalg.norm(x2, axis=1)
    n2 = jnp.linalg.norm(w2, axis=1)
    cos2 = ip2 / jnp.maximum(jnp.outer(n1, n2), 1e-8)
    oh2 = jax.nn.one_hot(l2, C2, dtype=cos2.dtype)
    ref_out2 = s_param * (cos2 + oh2 * m_param)
    ref_logits2 = s_param * cos2
    assert jnp.allclose(out2, ref_out2, atol=2e-2, rtol=1e-2), "output mismatch (test 2)"
    assert jnp.allclose(logits2, ref_logits2, atol=2e-2, rtol=1e-2), "logits mismatch (test 2)"

    print("KERNEL_OK")
</pallas_src>

<mosaic_0001>
module attributes {stable_mosaic.version = 11 : i64} {
  func.func @_margin_cosine_kernel(%arg0: i32, %arg1: i32, %arg2: memref<8x32xf32, #tpu.memory_space<vmem>>, %arg3: memref<16x32xf32, #tpu.memory_space<vmem>>, %arg4: memref<8x1xf32, #tpu.memory_space<vmem>>, %arg5: memref<16x1xf32, #tpu.memory_space<vmem>>, %arg6: memref<8x1xi32, #tpu.memory_space<vmem>>, %arg7: memref<8x16xf32, #tpu.memory_space<vmem>>, %arg8: memref<8x16xf32, #tpu.memory_space<vmem>>) attributes {dimension_semantics = [#tpu.dimension_semantics<parallel>, #tpu.dimension_semantics<arbitrary>], iteration_bounds = array<i64: 1, 1>, scalar_prefetch = 0 : i64, scratch_operands = 0 : i64, tpu.core_type = #tpu.core_type<tc>, window_params = [{transform_indices = @transform_0, window_bounds = array<i64: 8, 32>}, {transform_indices = @transform_1, window_bounds = array<i64: 16, 32>}, {transform_indices = @transform_2, window_bounds = array<i64: 8, 1>}, {transform_indices = @transform_3, window_bounds = array<i64: 16, 1>}, {transform_indices = @transform_4, window_bounds = array<i64: 8, 1>}, {transform_indices = @transform_5, window_bounds = array<i64: 8, 16>}, {transform_indices = @transform_6, window_bounds = array<i64: 8, 16>}]} {
    %c0 = arith.constant 0 : index
    %c0_0 = arith.constant 0 : index
    %0 = vector.load %arg2[%c0, %c0_0] : memref<8x32xf32, #tpu.memory_space<vmem>>, vector<8x32xf32>
    %c0_1 = arith.constant 0 : index
    %c0_2 = arith.constant 0 : index
    %1 = vector.load %arg3[%c0_1, %c0_2] : memref<16x32xf32, #tpu.memory_space<vmem>>, vector<16x32xf32>
    %cst = arith.constant dense<0.000000e+00> : vector<8x16xf32>
    %2 = tpu.matmul %0, %1, %cst {dimension_numbers = #tpu.dot_dimension_numbers<[1], [1], [0], [0], [0, 0, 1, 0], [], []>} : vector<8x32xf32>, vector<16x32xf32>, vector<8x16xf32> -> vector<8x16xf32>
    %c0_3 = arith.constant 0 : index
    %c0_4 = arith.constant 0 : index
    %3 = vector.load %arg4[%c0_3, %c0_4] : memref<8x1xf32, #tpu.memory_space<vmem>>, vector<8x1xf32>
    %c0_5 = arith.constant 0 : index
    %c0_6 = arith.constant 0 : index
    %4 = vector.load %arg5[%c0_5, %c0_6] : memref<16x1xf32, #tpu.memory_space<vmem>>, vector<16x1xf32>
    %5 = tpu.transpose %4, [1, 0] : vector<16x1xf32> -> vector<1x16xf32>
    %cst_7 = arith.constant 3.000000e+01 : f32
    %6 = vector.broadcast %cst_7 : f32 to vector<8x1xf32>
    %7 = arith.divf %6, %3 : vector<8x1xf32>
    %cst_8 = arith.constant 1.000000e+00 : f32
    %8 = vector.broadcast %cst_8 : f32 to vector<1x16xf32>
    %9 = arith.divf %8, %5 : vector<1x16xf32>
    %10 = vector.broadcast %3 : vector<8x1xf32> to vector<8x16xf32>
    %11 = vector.broadcast %5 : vector<1x16xf32> to vector<8x16xf32>
    %12 = arith.mulf %10, %11 : vector<8x16xf32>
    %cst_9 = arith.constant 9.99999993E-9 : f32
    %13 = vector.broadcast %cst_9 : f32 to vector<8x16xf32>
    %14 = arith.cmpf oge, %12, %13 : vector<8x16xf32>
    %15 = vector.broadcast %7 : vector<8x1xf32> to vector<8x16xf32>
    %16 = vector.broadcast %9 : vector<1x16xf32> to vector<8x16xf32>
    %17 = arith.mulf %15, %16 : vector<8x16xf32>
    %cst_10 = arith.constant 3.000000e+09 : f32
    %18 = vector.broadcast %cst_10 : f32 to vector<8x16xf32>
    %19 = arith.select %14, %17, %18 : vector<8x16xi1>, vector<8x16xf32>
    %20 = arith.mulf %2, %19 : vector<8x16xf32>
    %c0_11 = arith.constant 0 : index
    %c0_12 = arith.constant 0 : index
    %21 = vector.load %arg6[%c0_11, %c0_12] : memref<8x1xi32, #tpu.memory_space<vmem>>, vector<8x1xi32>
    %c16_i32 = arith.constant 16 : i32
    %22 = arith.muli %arg0, %c16_i32 : i32
    %23 = vector.broadcast %22 : i32 to vector<8x1xi32>
    %24 = arith.subi %21, %23 : vector<8x1xi32>
    %25 = tpu.iota {dimensions = array<i32: 1>} : vector<8x16xi32>
    %c0_13 = arith.constant 0 : index
    %c0_14 = arith.constant 0 : index
    %26 = vector.load %arg8[%c0_13, %c0_14] : memref<8x16xf32, #tpu.memory_space<vmem>>, vector<8x16xf32>
    tpu.vector_store %arg8[%c0_13, %c0_14], %20 {strides = array<i32>} : memref<8x16xf32, #tpu.memory_space<vmem>>, vector<8x16xf32>,
    %27 = vector.broadcast %24 : vector<8x1xi32> to vector<8x16xi32>
    %28 = arith.cmpi eq, %25, %27 : vector<8x16xi32>
    %cst_15 = arith.constant -1.050000e+01 : f32
    %29 = vector.broadcast %cst_15 : f32 to vector<8x16xf32>
    %30 = arith.addf %20, %29 : vector<8x16xf32>
    %31 = arith.select %28, %30, %20 : vector<8x16xi1>, vector<8x16xf32>
    %c0_16 = arith.constant 0 : index
    %c0_17 = arith.constant 0 : index
    %32 = vector.load %arg7[%c0_16, %c0_17] : memref<8x16xf32, #tpu.memory_space<vmem>>, vector<8x16xf32>
    tpu.vector_store %arg7[%c0_16, %c0_17], %31 {strides = array<i32>} : memref<8x16xf32, #tpu.memory_space<vmem>>, vector<8x16xf32>,
    return
  }
  func.func @transform_0(%arg0: i32, %arg1: i32) -> (i32, i32) {
    %c0_i32 = arith.constant 0 : i32
    %c0_i32_0 = arith.constant 0 : i32
    return %arg1, %c0_i32 : i32, i32
  }
  func.func @transform_1(%arg0: i32, %arg1: i32) -> (i32, i32) {
    %c0_i32 = arith.constant 0 : i32
    %c0_i32_0 = arith.constant 0 : i32
    return %arg0, %c0_i32 : i32, i32
  }
  func.func @transform_2(%arg0: i32, %arg1: i32) -> (i32, i32) {
    %c0_i32 = arith.constant 0 : i32
    %c0_i32_0 = arith.constant 0 : i32
    return %arg1, %c0_i32 : i32, i32
  }
  func.func @transform_3(%arg0: i32, %arg1: i32) -> (i32, i32) {
    %c0_i32 = arith.constant 0 : i32
    %c0_i32_0 = arith.constant 0 : i32
    return %arg0, %c0_i32 : i32, i32
  }
  func.func @transform_4(%arg0: i32, %arg1: i32) -> (i32, i32) {
    %c0_i32 = arith.constant 0 : i32
    %c0_i32_0 = arith.constant 0 : i32
    return %arg1, %c0_i32 : i32, i32
  }
  func.func @transform_5(%arg0: i32, %arg1: i32) -> (i32, i32) {
    %c0_i32 = arith.constant 0 : i32
    return %arg1, %arg0 : i32, i32
  }
  func.func @transform_6(%arg0: i32, %arg1: i32) -> (i32, i32) {
    %c0_i32 = arith.constant 0 : i32
    return %arg1, %arg0 : i32, i32
  }
}

</mosaic_0001>

<bundles_post_ra>
// kernel: tpu_custom_call.1
= control target key start
LH: loop header
LB: loop body
LE: loop exit
PB: predicated region body
PF: predicated region fallthrough
CT: control target
= control target key end

     0   :  { %12 = vsyncpa [#allocation3], 0  ;;  %vm27_vm0 = vcmask 261120   ;;  %v280_v2 = vmov 0.0   ;;  %v281_v3 = vmov 0   ;;  %s352_s0 = inlined_call_operand.vmem [shape: f32[8,32], index: 0, kind: input, shape index: {}]   ;;  %s353_s1 = inlined_call_operand.vmem [shape: f32[16,32], index: 1, kind: input, shape index: {}]   ;;  %s354_s2 = inlined_call_operand.vmem [shape: f32[8,1], index: 2, kind: input, shape index: {}]   ;;  %s355_s3 = inlined_call_operand.vmem [shape: f32[16,1], index: 3, kind: input, shape index: {}]   ;;  %s356_s4 = inlined_call_operand.vmem [shape: s32[8,1], index: 4, kind: input, shape index: {}]   ;;  %s357_s5 = inlined_call_operand.hbm [shape: f32[8,16], index: 5, kind: output, shape index: {0}]   ;;  %s358_s6 = inlined_call_operand.hbm [shape: f32[8,16], index: 6, kind: output, shape index: {1}]  }
   0x1   :  { %v26_v0 = vld [vmem:[%s353_s1 + $0x8] sm:$0xff]  ;;  %v169_v1 = vld [vmem:[%s356_s4] sm:$0xff]  ;;  %218 = vmatprep.subr.mxu0 %v280_v2  ;;  %231 = vset.pattern.permute.xlu1 %v281_v3 }
   0x2   :  { %219 = vmatpush3.xpose.msk.msra.mxu0 %vm27_vm0, %v26_v0  ;;  %178 = vperm.xlu1 %231, %v169_v1   ;;  %v107_v4 = vld [vmem:[%s354_s2] sm:$0xff] }
   0x3   :  { %13 = vsyncpa [#allocation5], 0  ;;  %220 = vmatprep.subr.mxu0 %v280_v2  ;;  %v25_v5 = vld [vmem:[%s353_s1] sm:$0xff]  ;;  %vm282_vm1 = vmmov 0   ;;  %232 = vrcp.f32 %v107_v4  ;;  %230 = vset.pattern.permute.xlu0 %v281_v3  ;;  %v109_v10 = vld [vmem:[%s355_s3 + $0x8] sm:$0xff]  ;;  %v151_v13 = vlaneseq  ;;  %vm175_vm3 = vcmask 130048  }
   0x4   :  { %222 = vmatprep.mubr.msk.f32.mxu0 %vm282_vm1, %v280_v2  ;;  %148 = vperm.xlu0 %230, %v107_v4   ;;  %v24_v6 = vld [vmem:[%s352_s0] sm:$0xff]  ;;  %s283_s0 = smov [#allocation4]  }
   0x5   :  { %v108_v9 = vld [vmem:[%s355_s3] sm:$0xff]  ;;  %v152_v14 = vshrl.u32 %v151_v13, 7  ;;  %s200_s8 = sshll.u32 %s283_s0, 4  ;;  %v174_v23 = vand.u32 127, %v151_v13  ;;  %s284_s3 = smov [#allocation2]   ;;  %s201_s8 = int_to_ptr.vmem [resolvable:$true] %s200_s8 }
   0x6   :  { %221 = vmatpush3.xpose.msk.msra.mxu0 %vm27_vm0, %v25_v5  ;;  %s190_s9 = sshll.u32 %s284_s3, 4  ;;  %s236_s10 = scalar_lea.vmem %s201_s8, 128  ;;  %s191_s9 = int_to_ptr.vmem [resolvable:$true] %s190_s9 }
   0x7   :  { %v153_v15 = vsub.s32 0, %v152_v14  ;;  %p237_p0 = scmp.ne.s32.totalorder %s201_s8, %s236_s10  ;;  %p241_p1 = scmp.lt.s32.totalorder %s201_s8, %s201_s8 }
   0x8   :  { %p242_p2 = scmp.lt.s32.totalorder %s236_s10, %s236_s10 }
   0x9   :  { %223 = vmatmul.mubr.msk.f32.vlgmr.msra.gmra.mxu0 %vm27_vm0, %v24_v6 }
   0xa   :  { %p243_p3 = por %p242_p2, %p241_p1 }
   0xc   :  { %p244_p4 = pnand %p243_p3, %p237_p0 }
  0x10   :  { %v233_v7 = vpop.eup %232 }
  0x11   :  { %v143_v8 = vmul.f32 30.0, %v233_v7 }
  0x13   :  { %159 = vperm.xlu0 %230, %v143_v8  }
  0x2b   :  { %110 = vxpose.xlu1.b32.start [1/2] (short) (narrow) %v108_v9, 8 }
  0x2f   :  { %111 = vxpose.xlu1.b32.end [2/2] (short) (narrow) %v109_v10, 8 }
  0x7d   :  { %v179_v11 = vpop.permute.xlu1 %178 }
  0x7e   :  { %vm180_vm4 = vcmp.eq.s32.totalorder %v174_v23, %v179_v11 }
  0x7f   :  { %v149_v16 = vpop.permute.xlu0 %148 }
  0x8e   :  { %v160_v21 = vpop.permute.xlu0 %159 }
  0xa7   :  { %v126_v12 = vpop.trf.xlu1 }
  0xa8   :  { %234 = vrcp.f32 %v126_v12  ;;  %v154_v18 = vrot.slane %v126_v12, %v153_v15 }
  0xaa   :  { %v155_v20 = vmul.f32 %v154_v18, %v149_v16 }
  0xac   :  { %vm156_vm2 = vcmp.ge.f32.partialorder %v155_v20, 1e-08 }
  0xb5   :  { %v235_v17 = vpop.eup %234 }
  0xb6   :  { %v165_v19 = vrot.slane %v235_v17, %v153_v15 }
  0xb8   :  { %v166_v22 = vmul.f32 %v165_v19, %v160_v21 }
  0xba   :  { %v167_v25 = vsel %vm156_vm2, %v166_v22, 3e+09 }
  0xc9   :  { %v103_v24 = vpop.f32.mrf.mxu0 }
  0xca   :  { %v168_v26 = vmul.f32 %v167_v25, %v103_v24 }
  0xcb   :  { %v224_v27 = vpop.f32.mrf.mxu0 }
  0xcc   :  { %v181_v28 = vadd.f32 -10.5, %v168_v26  ;;  %176 = vst.msk [vmem:[#allocation4] sm:$0xff] %vm175_vm3, %v168_v26 }
  0xcd   :  { %247 = shalt.err (!%p244_p4)
}
  0xce   :  { %203 = dma.vmem_to_hbm [thread:$0]  %s201_s8, 128, %s358_s6, [#allocation5]   ;;  %v182_v29 = vsel %vm180_vm4, %v181_v28, %v168_v26 }
  0xcf   :  { %183 = vst.msk [vmem:[#allocation2] sm:$0xff] %vm175_vm3, %v182_v29  ;;  %s256_s13 = scalar_lea.vmem %s191_s9, 128  ;;  %p261_p6 = scmp.lt.s32.totalorder %s191_s9, %s191_s9 }
  0xd0   :  { %p257_p5 = scmp.ne.s32.totalorder %s191_s9, %s256_s13  ;;  %p262_p7 = scmp.lt.s32.totalorder %s256_s13, %s256_s13 }
  0xd2   :  { %p263_p8 = por %p262_p7, %p261_p6 }
  0xd4   :  { %p264_p9 = pnand %p263_p8, %p257_p5 }
  0xd6   :  { %267 = shalt.err (!%p264_p9)
}
  0xd7   :  { %193 = dma.vmem_to_hbm [thread:$0]  %s191_s9, 128, %s357_s5, [#allocation3]  }
  0xd8   :  { %276 = dma.done.wait [#allocation3], 128  }
  0xd9   :  { %277 = vsyncadd [#allocation3], 4294967168 }
  0xda   :  { %278 = dma.done.wait [#allocation5], 128  }
  0xdb   :  { %279 = vsyncadd [#allocation5], 4294967168 }
  0xdc   :  { %210 = vsyncpa [#allocation3], 1 }
  0xdd   :  { %211 = vsyncpa [#allocation5], 1 }

</bundles_post_ra>
